<compile_context>
chip_gen: v7x
topology: tpu7x:2x2x1
jax: 0.10.0
libtpu: 0.0.40
codegen_flags: <defaults>
</compile_context>

<pallas_src>
import functools

import jax
import jax.numpy as jnp
from jax.experimental import pallas as pl
from jax.experimental.pallas import tpu as pltpu

D_IN = 28 * 28      # 784, kept unpadded (full-dim K block; same MXU pass count as 896)
H1 = 512
H2 = 256
NCLS_PAD = 128      # lane-dense class dimension
NEG_INF = -1e30     # padded-class bias -> exp() == 0 in the softmax


def mlp_kernel(x_ref, w1_ref, b1_ref, w2_ref, b2_ref, w3_ref, b3_ref, o_ref):
    # x arrives f32; cast to bf16 on the VPU (has slack) so the MXU runs bf16 passes.
    x = x_ref[...].astype(jnp.bfloat16)
    # fc1 + relu: bf16 MXU inputs, f32 accumulate / elementwise.
    h1 = jnp.dot(x, w1_ref[...], preferred_element_type=jnp.float32)
    h1 = jnp.maximum(h1 + b1_ref[...], 0.0)
    # fc2 + relu
    h2 = jnp.dot(h1.astype(jnp.bfloat16), w2_ref[...],
                 preferred_element_type=jnp.float32)
    h2 = jnp.maximum(h2 + b2_ref[...], 0.0)
    # fc3 logits over the padded, lane-dense class dim (padded bias = -1e30).
    logits = jnp.dot(h2.astype(jnp.bfloat16), w3_ref[...],
                     preferred_element_type=jnp.float32)
    logits = logits + b3_ref[...]
    # softmax over classes (padded columns contribute exp(-huge) = 0).
    m = jnp.max(logits, axis=-1, keepdims=True)
    e = jnp.exp(logits - m)
    denom = jnp.sum(e, axis=-1, keepdims=True)
    # Exact divide (not approx reciprocal) so rows sum to 1 at f32 precision.
    o_ref[...] = (e / denom).astype(o_ref.dtype)


def _round_up(x, m):
    return (x + m - 1) // m * m


@functools.partial(jax.jit, static_argnames=("tb",))
def mlp_forward(x_nchw, w1, b1, w2, b2, w3, b3, *, tb=1024):
    """x_nchw: (B, 1, 28, 28). Weights stored transposed vs. PyTorch: (in, out)."""
    B = x_nchw.shape[0]
    num_classes = w3.shape[1]

    # Flatten only: no feature padding, no wrapper-side bf16 cast (done in-kernel).
    x = x_nchw.reshape(B, -1).astype(jnp.float32)

    # Batch tile: multiple of 16 (bf16 sublane packing inside the kernel). Large by
    # default so the grid step is MXU-bound; capped by the (rounded-up) batch size.
    tb_eff = min(_round_up(tb, 16), _round_up(B, 16))
    b_pad = _round_up(B, tb_eff)
    # Keep >= 2 grid steps when possible so v7x can shard the batch across both TCs.
    if b_pad == tb_eff and tb_eff >= 32 and tb_eff % 32 == 0:
        tb_eff //= 2
        b_pad = _round_up(B, tb_eff)
    if b_pad != B:
        x = jnp.pad(x, ((0, b_pad - B), (0, 0)))

    # Weights: bf16 for the MXU; fc3 output columns zero-padded to 128 lanes.
    w1p = w1.astype(jnp.bfloat16)
    w2p = w2.astype(jnp.bfloat16)
    w3p = jnp.pad(w3, ((0, 0), (0, NCLS_PAD - num_classes))).astype(jnp.bfloat16)
    b1p = b1.reshape(1, H1).astype(jnp.float32)
    b2p = b2.reshape(1, H2).astype(jnp.float32)
    b3p = jnp.pad(b3.reshape(1, num_classes),
                  ((0, 0), (0, NCLS_PAD - num_classes)),
                  constant_values=NEG_INF).astype(jnp.float32)

    grid = (b_pad // tb_eff,)
    cost = pl.CostEstimate(
        flops=2 * b_pad * (D_IN * H1 + H1 * H2 + H2 * NCLS_PAD),
        transcendentals=b_pad * NCLS_PAD,
        bytes_accessed=(x.size * 4
                        + (w1p.size + w2p.size + w3p.size) * 2
                        + (b1p.size + b2p.size + b3p.size) * 4
                        + b_pad * NCLS_PAD * 2),
    )

    const = lambda i: (0, 0)
    out = pl.pallas_call(
        mlp_kernel,
        out_shape=jax.ShapeDtypeStruct((b_pad, NCLS_PAD), jnp.bfloat16),
        grid=grid,
        in_specs=[
            pl.BlockSpec((tb_eff, D_IN), lambda i: (i, 0)),   # x tile (pipelined)
            pl.BlockSpec((D_IN, H1), const),                  # weights: resident
            pl.BlockSpec((1, H1), const),
            pl.BlockSpec((H1, H2), const),
            pl.BlockSpec((1, H2), const),
            pl.BlockSpec((H2, NCLS_PAD), const),
            pl.BlockSpec((1, NCLS_PAD), const),
        ],
        out_specs=pl.BlockSpec((tb_eff, NCLS_PAD), lambda i: (i, 0)),
        compiler_params=pltpu.CompilerParams(
            dimension_semantics=("parallel",),
            vmem_limit_bytes=48 * 1024 * 1024),
        cost_estimate=cost,
    )(x, w1p, b1p, w2p, b2p, w3p, b3p)

    # Drop batch padding and padded class columns; return f32 probabilities.
    return out[:B, :num_classes].astype(jnp.float32)


def _init_linear(key, fan_in, fan_out):
    # Deterministic init mimicking nn.Linear defaults (Kaiming-uniform-ish),
    # stored transposed: (in_features, out_features).
    kw, kb = jax.random.split(key)
    bound = 1.0 / jnp.sqrt(fan_in)
    w = jax.random.uniform(kw, (fan_in, fan_out), jnp.float32, -bound, bound)
    b = jax.random.uniform(kb, (1, fan_out), jnp.float32, -bound, bound)
    return w, b


def _ref_forward(x_nchw, w1, b1, w2, b2, w3, b3):
    x = x_nchw.reshape(x_nchw.shape[0], -1)
    h1 = jnp.maximum(x @ w1 + b1, 0.0)
    h2 = jnp.maximum(h1 @ w2 + b2, 0.0)
    return jax.nn.softmax(h2 @ w3 + b3, axis=-1)


if __name__ == "__main__":
    key = jax.random.PRNGKey(0)
    kx, k1, k2, k3 = jax.random.split(key, 4)

    B, num_classes = 20, 10
    x = jax.random.normal(kx, (B, 1, 28, 28), jnp.float32)   # NCHW MNIST-like input

    w1, b1 = _init_linear(k1, D_IN, H1)
    w2, b2 = _init_linear(k2, H1, H2)
    w3, b3 = _init_linear(k3, H2, num_classes)

    # Small test: B=20 -> tile 16, batch padded to 32, 2 grid steps (exercises the
    # multi-step pipelined grid and the batch-padding path). Production batches use
    # the large default tile.
    out = mlp_forward(x, w1, b1, w2, b2, w3, b3)
    jax.block_until_ready(out)

    assert out.shape == (B, num_classes)
    # Softmax uses an exact divide; the only slack needed is bf16 output rounding.
    assert bool(jnp.all(jnp.abs(jnp.sum(out, axis=-1) - 1.0) < 1e-2))
    # Matches the pure-JAX reference within bf16-matmul / bf16-output tolerance.
    ref = _ref_forward(x, w1, b1, w2, b2, w3, b3)
    assert bool(jnp.max(jnp.abs(out - ref)) < 3e-2)
    print("KERNEL_OK")
</pallas_src>

<mosaic_0001>
module attributes {stable_mosaic.version = 11 : i64} {
  func.func @mlp_kernel(%arg0: i32, %arg1: memref<16x784xf32, #tpu.memory_space<vmem>>, %arg2: memref<784x512xbf16, #tpu.memory_space<vmem>>, %arg3: memref<1x512xf32, #tpu.memory_space<vmem>>, %arg4: memref<512x256xbf16, #tpu.memory_space<vmem>>, %arg5: memref<1x256xf32, #tpu.memory_space<vmem>>, %arg6: memref<256x128xbf16, #tpu.memory_space<vmem>>, %arg7: memref<1x128xf32, #tpu.memory_space<vmem>>, %arg8: memref<16x128xbf16, #tpu.memory_space<vmem>>) attributes {dimension_semantics = [#tpu.dimension_semantics<parallel>], iteration_bounds = array<i64: 2>, scalar_prefetch = 0 : i64, scratch_operands = 0 : i64, tpu.core_type = #tpu.core_type<tc>, window_params = [{transform_indices = @transform_0, window_bounds = array<i64: 16, 784>}, {pipeline_mode = #tpu.pipeline_mode<synchronous>, transform_indices = @transform_1, window_bounds = array<i64: 784, 512>}, {pipeline_mode = #tpu.pipeline_mode<synchronous>, transform_indices = @transform_2, window_bounds = array<i64: 1, 512>}, {pipeline_mode = #tpu.pipeline_mode<synchronous>, transform_indices = @transform_3, window_bounds = array<i64: 512, 256>}, {pipeline_mode = #tpu.pipeline_mode<synchronous>, transform_indices = @transform_4, window_bounds = array<i64: 1, 256>}, {pipeline_mode = #tpu.pipeline_mode<synchronous>, transform_indices = @transform_5, window_bounds = array<i64: 256, 128>}, {pipeline_mode = #tpu.pipeline_mode<synchronous>, transform_indices = @transform_6, window_bounds = array<i64: 1, 128>}, {transform_indices = @transform_7, window_bounds = array<i64: 16, 128>}]} {
    %c0 = arith.constant 0 : index
    %c0_0 = arith.constant 0 : index
    %0 = vector.load %arg1[%c0, %c0_0] : memref<16x784xf32, #tpu.memory_space<vmem>>, vector<16x784xf32>
    %1 = arith.truncf %0 : vector<16x784xf32> to vector<16x784xbf16>
    %c0_1 = arith.constant 0 : index
    %c0_2 = arith.constant 0 : index
    %2 = vector.load %arg2[%c0_1, %c0_2] : memref<784x512xbf16, #tpu.memory_space<vmem>>, vector<784x512xbf16>
    %cst = arith.constant dense<0.000000e+00> : vector<16x512xf32>
    %3 = tpu.matmul %1, %2, %cst {dimension_numbers = #tpu.dot_dimension_numbers<[1], [0], [0], [1], [0, 0, 1, 1], [], []>} : vector<16x784xbf16>, vector<784x512xbf16>, vector<16x512xf32> -> vector<16x512xf32>
    %c0_3 = arith.constant 0 : index
    %c0_4 = arith.constant 0 : index
    %4 = vector.load %arg3[%c0_3, %c0_4] : memref<1x512xf32, #tpu.memory_space<vmem>>, vector<1x512xf32>
    %5 = vector.broadcast %4 : vector<1x512xf32> to vector<16x512xf32>
    %6 = arith.addf %3, %5 : vector<16x512xf32>
    %cst_5 = arith.constant 0.000000e+00 : f32
    %7 = vector.broadcast %cst_5 : f32 to vector<16x512xf32>
    %8 = arith.maximumf %6, %7 : vector<16x512xf32>
    %9 = arith.truncf %8 : vector<16x512xf32> to vector<16x512xbf16>
    %c0_6 = arith.constant 0 : index
    %c0_7 = arith.constant 0 : index
    %10 = vector.load %arg4[%c0_6, %c0_7] : memref<512x256xbf16, #tpu.memory_space<vmem>>, vector<512x256xbf16>
    %cst_8 = arith.constant dense<0.000000e+00> : vector<16x256xf32>
    %11 = tpu.matmul %9, %10, %cst_8 {dimension_numbers = #tpu.dot_dimension_numbers<[1], [0], [0], [1], [0, 0, 1, 1], [], []>} : vector<16x512xbf16>, vector<512x256xbf16>, vector<16x256xf32> -> vector<16x256xf32>
    %c0_9 = arith.constant 0 : index
    %c0_10 = arith.constant 0 : index
    %12 = vector.load %arg5[%c0_9, %c0_10] : memref<1x256xf32, #tpu.memory_space<vmem>>, vector<1x256xf32>
    %13 = vector.broadcast %12 : vector<1x256xf32> to vector<16x256xf32>
    %14 = arith.addf %11, %13 : vector<16x256xf32>
    %cst_11 = arith.constant 0.000000e+00 : f32
    %15 = vector.broadcast %cst_11 : f32 to vector<16x256xf32>
    %16 = arith.maximumf %14, %15 : vector<16x256xf32>
    %17 = arith.truncf %16 : vector<16x256xf32> to vector<16x256xbf16>
    %c0_12 = arith.constant 0 : index
    %c0_13 = arith.constant 0 : index
    %18 = vector.load %arg6[%c0_12, %c0_13] : memref<256x128xbf16, #tpu.memory_space<vmem>>, vector<256x128xbf16>
    %cst_14 = arith.constant dense<0.000000e+00> : vector<16x128xf32>
    %19 = tpu.matmul %17, %18, %cst_14 {dimension_numbers = #tpu.dot_dimension_numbers<[1], [0], [0], [1], [0, 0, 1, 1], [], []>} : vector<16x256xbf16>, vector<256x128xbf16>, vector<16x128xf32> -> vector<16x128xf32>
    %c0_15 = arith.constant 0 : index
    %c0_16 = arith.constant 0 : index
    %20 = vector.load %arg7[%c0_15, %c0_16] : memref<1x128xf32, #tpu.memory_space<vmem>>, vector<1x128xf32>
    %21 = vector.broadcast %20 : vector<1x128xf32> to vector<16x128xf32>
    %22 = arith.addf %19, %21 : vector<16x128xf32>
    %cst_17 = arith.constant dense<0xFF800000> : vector<16xf32>
    %23 = vector.multi_reduction <maximumf>, %22, %cst_17 [1] : vector<16x128xf32> to vector<16xf32>
    %24 = vector.shape_cast %23 : vector<16xf32> to vector<16x1xf32>
    %25 = vector.broadcast %24 : vector<16x1xf32> to vector<16x128xf32>
    %26 = arith.subf %22, %25 : vector<16x128xf32>
    %27 = math.exp %26 : vector<16x128xf32>
    %cst_18 = arith.constant dense<0.000000e+00> : vector<16xf32>
    %28 = vector.multi_reduction <add>, %27, %cst_18 [1] : vector<16x128xf32> to vector<16xf32>
    %29 = vector.shape_cast %28 : vector<16xf32> to vector<16x1xf32>
    %30 = vector.broadcast %29 : vector<16x1xf32> to vector<16x128xf32>
    %31 = arith.divf %27, %30 : vector<16x128xf32>
    %32 = arith.truncf %31 : vector<16x128xf32> to vector<16x128xbf16>
    %c0_19 = arith.constant 0 : index
    %c0_20 = arith.constant 0 : index
    %33 = vector.load %arg8[%c0_19, %c0_20] : memref<16x128xbf16, #tpu.memory_space<vmem>>, vector<16x128xbf16>
    tpu.vector_store %arg8[%c0_19, %c0_20], %32 {strides = array<i32>} : memref<16x128xbf16, #tpu.memory_space<vmem>>, vector<16x128xbf16>,
    return
  }
  func.func @transform_0(%arg0: i32) -> (i32, i32) {
    %c0_i32 = arith.constant 0 : i32
    %c0_i32_0 = arith.constant 0 : i32
    return %arg0, %c0_i32 : i32, i32
  }
  func.func @transform_1(%arg0: i32) -> (i32, i32) {
    %c0_i32 = arith.constant 0 : i32
    %c0_i32_0 = arith.constant 0 : i32
    %c0_i32_1 = arith.constant 0 : i32
    return %c0_i32, %c0_i32_0 : i32, i32
  }
  func.func @transform_2(%arg0: i32) -> (i32, i32) {
    %c0_i32 = arith.constant 0 : i32
    %c0_i32_0 = arith.constant 0 : i32
    %c0_i32_1 = arith.constant 0 : i32
    return %c0_i32, %c0_i32_0 : i32, i32
  }
  func.func @transform_3(%arg0: i32) -> (i32, i32) {
    %c0_i32 = arith.constant 0 : i32
    %c0_i32_0 = arith.constant 0 : i32
    %c0_i32_1 = arith.constant 0 : i32
    return %c0_i32, %c0_i32_0 : i32, i32
  }
  func.func @transform_4(%arg0: i32) -> (i32, i32) {
    %c0_i32 = arith.constant 0 : i32
    %c0_i32_0 = arith.constant 0 : i32
    %c0_i32_1 = arith.constant 0 : i32
    return %c0_i32, %c0_i32_0 : i32, i32
  }
  func.func @transform_5(%arg0: i32) -> (i32, i32) {
    %c0_i32 = arith.constant 0 : i32
    %c0_i32_0 = arith.constant 0 : i32
    %c0_i32_1 = arith.constant 0 : i32
    return %c0_i32, %c0_i32_0 : i32, i32
  }
  func.func @transform_6(%arg0: i32) -> (i32, i32) {
    %c0_i32 = arith.constant 0 : i32
    %c0_i32_0 = arith.constant 0 : i32
    %c0_i32_1 = arith.constant 0 : i32
    return %c0_i32, %c0_i32_0 : i32, i32
  }
  func.func @transform_7(%arg0: i32) -> (i32, i32) {
    %c0_i32 = arith.constant 0 : i32
    %c0_i32_0 = arith.constant 0 : i32
    return %arg0, %c0_i32 : i32, i32
  }
}

</mosaic_0001>

<bundles_post_ra>
// kernel: mlp_forward.1
= control target key start
LH: loop header
LB: loop body
LE: loop exit
PB: predicated region body
PF: predicated region fallthrough
CT: control target
= control target key end

     0   :  { %s3447_s24 = smov 0   ;;  %s4379_s0 = inlined_call_operand.vmem [shape: f32[32,784], index: 0, kind: input, shape index: {}]   ;;  %s4380_s1 = inlined_call_operand.vmem [shape: bf16[784,512], index: 1, kind: input, shape index: {}]   ;;  %s4381_s2 = inlined_call_operand.vmem [shape: f32[1,512], index: 2, kind: input, shape index: {}]   ;;  %s4382_s3 = inlined_call_operand.vmem [shape: bf16[512,256], index: 3, kind: input, shape index: {}]   ;;  %s4383_s4 = inlined_call_operand.vmem [shape: f32[1,256], index: 4, kind: input, shape index: {}]   ;;  %s4384_s5 = inlined_call_operand.vmem [shape: bf16[256,128], index: 5, kind: input, shape index: {}]   ;;  %s4385_s6 = inlined_call_operand.vmem [shape: f32[1,128], index: 6, kind: input, shape index: {}]   ;;  %s4386_s7 = inlined_call_operand.vmem [shape: bf16[32,128], index: 7, kind: output, shape index: {}]  }
   0x1 LB: > { %s2613_s25 = sadd.s32 4294967295, %s3404_s24   ;;  %p2617_p0 = scmp.ge.s32.totalorder %s3404_s24, 1  ;;  %s3404_s24 = sphi %s3447_s24, %s17_s24  }
   0x2   : > { %p239_p1 = scmp.lt.s32.totalorder %s3404_s24, 3 }
   0x4   : > { %p240_p2 = pnand %p2617_p0, %p239_p1 }
   0x5   : > { %v2984_v0 = vld [vmem:[%s4380_s1 + $0x4] ss:$16 sps:$4 sm:$0xff] (!%p240_p2)   ;;  %v2988_v2 = vld [vmem:[%s4380_s1] ss:$16 sps:$4 sm:$0xff] (!%p240_p2)   ;;  %s2618_s19 = sshll.u32 (!%p240_p2), %s2613_s25, 1  ;;  %vm1505_vm0 = vcmask (!%p240_p2), 130048  }
   0x6   : > { %243 = sbr.rel (%p240_p2) target bundleno = 1244 (0x4dc), region = 48  ;;  %v2986_v1 = vld [vmem:[%s4380_s1 + $0x204] ss:$16 sps:$4 sm:$0xff] (!%p240_p2)   ;;  %1509 = vmatprep.subr.bf16.mxu1 (!%p240_p2), %v2984_v0  ;;  %v2989_v3 = vld [vmem:[%s4380_s1 + $0x200] ss:$16 sps:$4 sm:$0xff] (!%p240_p2)   ;;  %p273_p3 = scmp.lt.s32.totalorder (!%p240_p2), %s2618_s19, 3 }
   0x7   : > { %1552 = vmatprep.subr.bf16.mxu0 (!%p240_p2), %v2986_v1  ;;  %v2990_v4 = vld [vmem:[%s4380_s1 + $0x24] ss:$16 sps:$4 sm:$0xff] (!%p240_p2)   ;;  %1510 = vmatpush1.bf16.msra.mxu1 (!%p240_p2), %v2988_v2  ;;  %v2994_v6 = vld [vmem:[%s4380_s1 + $0x20] ss:$16 sps:$4 sm:$0xff] (!%p240_p2)  }
   0x8   : > { %1553 = vmatpush1.bf16.msra.mxu0 (!%p240_p2), %v2989_v3  ;;  %v2992_v5 = vld [vmem:[%s4380_s1 + $0x224] ss:$16 sps:$4 sm:$0xff] (!%p240_p2)   ;;  %1511 = vmatprep.subr.bf16.mxu1 (!%p240_p2), %v2990_v4  ;;  %v2995_v7 = vld [vmem:[%s4380_s1 + $0x220] ss:$16 sps:$4 sm:$0xff] (!%p240_p2)  }
   0x9   : > { %1554 = vmatprep.subr.bf16.mxu0 (!%p240_p2), %v2992_v5  ;;  %v2996_v8 = vld [vmem:[%s4380_s1 + $0x44] ss:$16 sps:$4 sm:$0xff] (!%p240_p2)   ;;  %v3000_v10 = vld [vmem:[%s4380_s1 + $0x40] ss:$16 sps:$4 sm:$0xff] (!%p240_p2)  }
   0xa   : > { %v2998_v9 = vld [vmem:[%s4380_s1 + $0x244] ss:$16 sps:$4 sm:$0xff] (!%p240_p2)   ;;  %v3001_v11 = vld [vmem:[%s4380_s1 + $0x240] ss:$16 sps:$4 sm:$0xff] (!%p240_p2)  }
   0xb   : > { %1512 = vmatpush1.bf16.msra.mxu1 (!%p240_p2), %v2994_v6  ;;  %v3002_v12 = vld [vmem:[%s4380_s1 + $0x64] ss:$16 sps:$4 sm:$0xff] (!%p240_p2)   ;;  %v3006_v14 = vld [vmem:[%s4380_s1 + $0x60] ss:$16 sps:$4 sm:$0xff] (!%p240_p2)  }
   0xc   : > { %1555 = vmatpush1.bf16.msra.mxu0 (!%p240_p2), %v2995_v7  ;;  %1513 = vmatprep.subr.bf16.mxu1 (!%p240_p2), %v2996_v8  ;;  %v3004_v13 = vld [vmem:[%s4380_s1 + $0x264] ss:$16 sps:$4 sm:$0xff] (!%p240_p2)   ;;  %v3007_v15 = vld [vmem:[%s4380_s1 + $0x260] ss:$16 sps:$4 sm:$0xff] (!%p240_p2)  }
   0xd   : > { %1556 = vmatprep.subr.bf16.mxu0 %v2998_v9  ;;  %v3008_v16 = vld [vmem:[%s4380_s1 + $0x84] ss:$16 sps:$4 sm:$0xff]   ;;  %v3012_v18 = vld [vmem:[%s4380_s1 + $0x80] ss:$16 sps:$4 sm:$0xff]   ;;  %s4388_s19 = smov (!%p273_p3, %s2618_s19), 3 }
   0xe   : > { %v3010_v17 = vld [vmem:[%s4380_s1 + $0x284] ss:$16 sps:$4 sm:$0xff]   ;;  %v3013_v19 = vld [vmem:[%s4380_s1 + $0x280] ss:$16 sps:$4 sm:$0xff]   ;;  %s2974_s18 = smul.u32 56, %s4388_s19  ;;  %s2621_s25 = sshll.u32 %s4388_s19, 2 }
   0xf   : > { %1514 = vmatpush1.bf16.msra.mxu1 %v3000_v10  ;;  %v3014_v20 = vld [vmem:[%s4380_s1 + $0xa4] ss:$16 sps:$4 sm:$0xff]   ;;  %v3018_v22 = vld [vmem:[%s4380_s1 + $0xa0] ss:$16 sps:$4 sm:$0xff]   ;;  %s283_s9 = scalar_lea.vmem %s4386_s7, %s2621_s25 }
  0x10   : > { %1557 = vmatpush1.bf16.msra.mxu0 %v3001_v11  ;;  %1515 = vmatprep.subr.bf16.mxu1 %v3002_v12  ;;  %v3016_v21 = vld [vmem:[%s4380_s1 + $0x2a4] ss:$16 sps:$4 sm:$0xff]   ;;  %v3019_v23 = vld [vmem:[%s4380_s1 + $0x2a0] ss:$16 sps:$4 sm:$0xff]   ;;  %s3595_s10 = scalar_lea.vmem %s4379_s0, %s2974_s18  ;;  %v3085_v11 = vld [vmem:[%s4380_s1 + $0xc] ss:$16 sps:$4 sm:$0xff]  }
  0x11   : > { %1558 = vmatprep.subr.bf16.mxu0 %v3004_v13  ;;  %v3020_v24 = vld [vmem:[%s4380_s1 + $0xc4] ss:$16 sps:$4 sm:$0xff]   ;;  %v3024_v26 = vld [vmem:[%s4380_s1 + $0xc0] ss:$16 sps:$4 sm:$0xff]   ;;  %v287_v46 = vld [vmem:[%s3595_s10 + $0x8] sm:$0xff] }
  0x12   : > { %v3022_v25 = vld [vmem:[%s4380_s1 + $0x2c4] ss:$16 sps:$4 sm:$0xff]   ;;  %v3025_v27 = vld [vmem:[%s4380_s1 + $0x2c0] ss:$16 sps:$4 sm:$0xff]   ;;  %v289_v51 = vld [vmem:[%s3595_s10 + $0x18] sm:$0xff] }
  0x13   : > { %1516 = vmatpush1.bf16.msra.mxu1 %v3006_v14  ;;  %v3026_v28 = vld [vmem:[%s4380_s1 + $0xe4] ss:$16 sps:$4 sm:$0xff]   ;;  %v3030_v30 = vld [vmem:[%s4380_s1 + $0xe0] ss:$16 sps:$4 sm:$0xff]   ;;  %v293_v7 = vld [vmem:[%s3595_s10 + $0x38] sm:$0xff] }
  0x14   : > { %1559 = vmatpush1.bf16.msra.mxu0 %v3007_v15  ;;  %1517 = vmatprep.subr.bf16.mxu1 %v3008_v16  ;;  %v3028_v29 = vld [vmem:[%s4380_s1 + $0x2e4] ss:$16 sps:$4 sm:$0xff]   ;;  %v3031_v31 = vld [vmem:[%s4380_s1 + $0x2e0] ss:$16 sps:$4 sm:$0xff]   ;;  %v295_v10 = vld [vmem:[%s3595_s10 + $0x48] sm:$0xff] }
  0x15   : > { %1560 = vmatprep.subr.bf16.mxu0 %v3010_v17  ;;  %v3032_v32 = vld [vmem:[%s4380_s1 + $0x104] ss:$16 sps:$4 sm:$0xff]   ;;  %v3036_v34 = vld [vmem:[%s4380_s1 + $0x100] ss:$16 sps:$4 sm:$0xff]   ;;  %v3083_v14 = vld [vmem:[%s4380_s1 + $0x8] ss:$16 sps:$4 sm:$0xff]  }
  0x16   : > { %v3034_v33 = vld [vmem:[%s4380_s1 + $0x304] ss:$16 sps:$4 sm:$0xff]   ;;  %v3037_v35 = vld [vmem:[%s4380_s1 + $0x300] ss:$16 sps:$4 sm:$0xff]   ;;  %v3091_v17 = vld [vmem:[%s4380_s1 + $0x2c] ss:$16 sps:$4 sm:$0xff]  }
  0x17   : > { %1518 = vmatpush1.bf16.msra.mxu1 %v3012_v18  ;;  %v3038_v36 = vld [vmem:[%s4380_s1 + $0x124] ss:$16 sps:$4 sm:$0xff]   ;;  %v3042_v38 = vld [vmem:[%s4380_s1 + $0x120] ss:$16 sps:$4 sm:$0xff]  }
  0x18   : > { %1561 = vmatpush1.bf16.msra.mxu0 %v3013_v19  ;;  %1519 = vmatprep.subr.bf16.mxu1 %v3014_v20  ;;  %v3040_v37 = vld [vmem:[%s4380_s1 + $0x324] ss:$16 sps:$4 sm:$0xff]   ;;  %v3043_v39 = vld [vmem:[%s4380_s1 + $0x320] ss:$16 sps:$4 sm:$0xff]   ;;  %v3089_v19 = vld [vmem:[%s4380_s1 + $0x28] ss:$16 sps:$4 sm:$0xff]  }
  0x19   : > { %1562 = vmatprep.subr.bf16.mxu0 %v3016_v21  ;;  %v3044_v40 = vld [vmem:[%s4380_s1 + $0x144] ss:$16 sps:$4 sm:$0xff]   ;;  %v3048_v42 = vld [vmem:[%s4380_s1 + $0x140] ss:$16 sps:$4 sm:$0xff]   ;;  %v3097_v21 = vld [vmem:[%s4380_s1 + $0x4c] ss:$16 sps:$4 sm:$0xff]  }
  0x1a   : > { %v3046_v41 = vld [vmem:[%s4380_s1 + $0x344] ss:$16 sps:$4 sm:$0xff]   ;;  %v3049_v43 = vld [vmem:[%s4380_s1 + $0x340] ss:$16 sps:$4 sm:$0xff]  }
  0x1b   : > { %1520 = vmatpush1.bf16.msra.mxu1 %v3018_v22  ;;  %v3050_v44 = vld [vmem:[%s4380_s1 + $0x164] ss:$16 sps:$4 sm:$0xff]   ;;  %v3054_v47 = vld [vmem:[%s4380_s1 + $0x160] ss:$16 sps:$4 sm:$0xff]  }
  0x1c   : > { %1563 = vmatpush1.bf16.msra.mxu0 %v3019_v23  ;;  %1521 = vmatprep.subr.bf16.mxu1 %v3020_v24  ;;  %v3052_v45 = vld [vmem:[%s4380_s1 + $0x364] ss:$16 sps:$4 sm:$0xff]   ;;  %v3055_v48 = vld [vmem:[%s4380_s1 + $0x360] ss:$16 sps:$4 sm:$0xff]   ;;  %v3095_v23 = vld [vmem:[%s4380_s1 + $0x48] ss:$16 sps:$4 sm:$0xff]  }
  0x1d   : > { %1564 = vmatprep.subr.bf16.mxu0 %v3022_v25  ;;  %v294_v49 = vld [vmem:[%s3595_s10 + $0x40] sm:$0xff]  ;;  %v296_v52 = vld [vmem:[%s3595_s10 + $0x50] sm:$0xff]  ;;  %v3103_v25 = vld [vmem:[%s4380_s1 + $0x6c] ss:$16 sps:$4 sm:$0xff]  }
  0x1e   : > { %v3611_v50 = vpack.c.bf16 %v294_v49, %v287_v46  ;;  %v3056_v53 = vld [vmem:[%s4380_s1 + $0x184] ss:$16 sps:$4 sm:$0xff]   ;;  %v3621_v55 = vpack.c.bf16 %v296_v52, %v289_v51  ;;  %v3060_v56 = vld [vmem:[%s4380_s1 + $0x180] ss:$16 sps:$4 sm:$0xff]   ;;  %v3125_v46 = vld [vmem:[%s4380_s1 + $0xe8] ss:$16 sps:$4 sm:$0xff]  }
  0x1f   : > { %1522 = vmatpush1.bf16.msra.mxu1 %v3024_v26  ;;  %v3058_v54 = vld [vmem:[%s4380_s1 + $0x384] ss:$16 sps:$4 sm:$0xff]   ;;  %v3061_v57 = vld [vmem:[%s4380_s1 + $0x380] ss:$16 sps:$4 sm:$0xff]   ;;  %v3139_v52 = vld [vmem:[%s4380_s1 + $0x12c] ss:$16 sps:$4 sm:$0xff]  }
  0x20   : > { %1565 = vmatpush1.bf16.msra.mxu0 %v3025_v27  ;;  %1523 = vmatprep.subr.bf16.mxu1 %v3026_v28  ;;  %v3062_v58 = vld [vmem:[%s4380_s1 + $0x1a4] ss:$16 sps:$4 sm:$0xff]   ;;  %v3066_v60 = vld [vmem:[%s4380_s1 + $0x1a0] ss:$16 sps:$4 sm:$0xff]   ;;  %v3101_v27 = vld [vmem:[%s4380_s1 + $0x68] ss:$16 sps:$4 sm:$0xff]  }
  0x21   : > { %1566 = vmatprep.subr.bf16.mxu0 %v3028_v29  ;;  %1541 = vmatprep.mubr.bf16.mxu1 %v3611_v50  ;;  %v3064_v59 = vld [vmem:[%s4380_s1 + $0x3a4] ss:$16 sps:$4 sm:$0xff]   ;;  %v3067_v61 = vld [vmem:[%s4380_s1 + $0x3a0] ss:$16 sps:$4 sm:$0xff]   ;;  %v3109_v29 = vld [vmem:[%s4380_s1 + $0x8c] ss:$16 sps:$4 sm:$0xff]  }
  0x22   : > { %1584 = vmatprep.mubr.bf16.mxu0 %v3621_v55  ;;  %v3068_v62 = vld [vmem:[%s4380_s1 + $0x1c4] ss:$16 sps:$4 sm:$0xff]   ;;  %v3072_v0 = vld [vmem:[%s4380_s1 + $0x1c0] ss:$16 sps:$4 sm:$0xff]  }
  0x23   : > { %1524 = vmatpush1.bf16.msra.mxu1 %v3030_v30  ;;  %v3070_v63 = vld [vmem:[%s4380_s1 + $0x3c4] ss:$16 sps:$4 sm:$0xff]   ;;  %v3073_v1 = vld [vmem:[%s4380_s1 + $0x3c0] ss:$16 sps:$4 sm:$0xff]  }
  0x24   : > { %1567 = vmatpush1.bf16.msra.mxu0 %v3031_v31  ;;  %1525 = vmatprep.subr.bf16.mxu1 %v3032_v32  ;;  %v3074_v2 = vld [vmem:[%s4380_s1 + $0x1e4] ss:$16 sps:$4 sm:$0xff]   ;;  %v3078_v4 = vld [vmem:[%s4380_s1 + $0x1e0] ss:$16 sps:$4 sm:$0xff]   ;;  %v3107_v31 = vld [vmem:[%s4380_s1 + $0x88] ss:$16 sps:$4 sm:$0xff]  }
  0x25   : > { %1568 = vmatprep.subr.bf16.mxu0 %v3034_v33  ;;  %v3076_v3 = vld [vmem:[%s4380_s1 + $0x3e4] ss:$16 sps:$4 sm:$0xff]   ;;  %v3079_v5 = vld [vmem:[%s4380_s1 + $0x3e0] ss:$16 sps:$4 sm:$0xff]   ;;  %v3115_v33 = vld [vmem:[%s4380_s1 + $0xac] ss:$16 sps:$4 sm:$0xff]  }
  0x26   : > { %v286_v6 = vld [vmem:[%s3595_s10] sm:$0xff]  ;;  %v288_v9 = vld [vmem:[%s3595_s10 + $0x10] sm:$0xff] }
  0x27   : > { %1526 = vmatpush1.bf16.msra.mxu1 %v3036_v34  ;;  %v3082_v8 = vld [vmem:[%s4380_s1 + $0x404] ss:$16 sps:$4 sm:$0xff]   ;;  %v3677_v12 = vpack.c.bf16 %v293_v7, %v286_v6  ;;  %v3080_v13 = vld [vmem:[%s4380_s1 + $0x400] ss:$16 sps:$4 sm:$0xff]   ;;  %v3685_v15 = vpack.c.bf16 %v295_v10, %v288_v9  ;;  %v3161_v7 = vld [vmem:[%s4380_s1 + $0x1a8] ss:$16 sps:$4 sm:$0xff]  }
  0x28   : > { %1569 = vmatpush1.bf16.msra.mxu0 %v3037_v35  ;;  %1527 = vmatprep.subr.bf16.mxu1 %v3038_v36  ;;  %v3088_v16 = vld [vmem:[%s4380_s1 + $0x424] ss:$16 sps:$4 sm:$0xff]   ;;  %v3086_v18 = vld [vmem:[%s4380_s1 + $0x420] ss:$16 sps:$4 sm:$0xff]   ;;  %v3113_v35 = vld [vmem:[%s4380_s1 + $0xa8] ss:$16 sps:$4 sm:$0xff]  }
  0x29   : > { %1570 = vmatprep.subr.bf16.mxu0 %v3040_v37  ;;  %v3094_v20 = vld [vmem:[%s4380_s1 + $0x444] ss:$16 sps:$4 sm:$0xff]   ;;  %v3092_v22 = vld [vmem:[%s4380_s1 + $0x440] ss:$16 sps:$4 sm:$0xff]   ;;  %v3121_v37 = vld [vmem:[%s4380_s1 + $0xcc] ss:$16 sps:$4 sm:$0xff]  }
  0x2a   : > { %v3100_v24 = vld [vmem:[%s4380_s1 + $0x464] ss:$16 sps:$4 sm:$0xff]   ;;  %v3098_v26 = vld [vmem:[%s4380_s1 + $0x460] ss:$16 sps:$4 sm:$0xff]   ;;  %v3169_v9 = vld [vmem:[%s4380_s1 + $0x1cc] ss:$16 sps:$4 sm:$0xff]  }
  0x2b   : > { %1528 = vmatpush1.bf16.msra.mxu1 %v3042_v38  ;;  %v3106_v28 = vld [vmem:[%s4380_s1 + $0x484] ss:$16 sps:$4 sm:$0xff]   ;;  %v3104_v30 = vld [vmem:[%s4380_s1 + $0x480] ss:$16 sps:$4 sm:$0xff]  }
  0x2c   : > { %1571 = vmatpush1.bf16.msra.mxu0 %v3043_v39  ;;  %1529 = vmatprep.subr.bf16.mxu1 %v3044_v40  ;;  %v3112_v32 = vld [vmem:[%s4380_s1 + $0x4a4] ss:$16 sps:$4 sm:$0xff]   ;;  %v3110_v34 = vld [vmem:[%s4380_s1 + $0x4a0] ss:$16 sps:$4 sm:$0xff]   ;;  %v3119_v39 = vld [vmem:[%s4380_s1 + $0xc8] ss:$16 sps:$4 sm:$0xff]  }
  0x2d   : > { %1572 = vmatprep.subr.bf16.mxu0 %v3046_v41  ;;  %v3118_v36 = vld [vmem:[%s4380_s1 + $0x4c4] ss:$16 sps:$4 sm:$0xff]   ;;  %v3116_v38 = vld [vmem:[%s4380_s1 + $0x4c0] ss:$16 sps:$4 sm:$0xff]   ;;  %v291_v41 = vld [vmem:[%s3595_s10 + $0x28] sm:$0xff] }
  0x2e   : > { %v3124_v40 = vld [vmem:[%s4380_s1 + $0x4e4] ss:$16 sps:$4 sm:$0xff]   ;;  %v3128_v49 = vld [vmem:[%s4380_s1 + $0x500] ss:$16 sps:$4 sm:$0xff]  }
  0x2f   : > { %1530 = vmatpush1.bf16.msra.mxu1 %v3048_v42  ;;  %v298_v42 = vld [vmem:[%s3595_s10 + $0x60] sm:$0xff] }
  0x30   : > { %1573 = vmatpush1.bf16.msra.mxu0 %v3049_v43  ;;  %1531 = vmatprep.subr.bf16.mxu1 %v3050_v44  ;;  %v3127_v43 = vld [vmem:[%s4380_s1 + $0xec] ss:$16 sps:$4 sm:$0xff]   ;;  %v3770_v44 = vpack.c.bf16 %v298_v42, %v291_v41  ;;  %v3136_v51 = vld [vmem:[%s4380_s1 + $0x524] ss:$16 sps:$4 sm:$0xff]   ;;  %v3158_v6 = vld [vmem:[%s4380_s1 + $0x5a0] ss:$16 sps:$4 sm:$0xff]  }
  0x31   : > { %1574 = vmatprep.subr.bf16.mxu0 %v3052_v45  ;;  %v3122_v45 = vld [vmem:[%s4380_s1 + $0x4e0] ss:$16 sps:$4 sm:$0xff]   ;;  %v3202_v41 = vld [vmem:[%s4380_s1 + $0x2ec] ss:$16 sps:$4 sm:$0xff]  }
  0x32   : > { %v3164_v10 = vld [vmem:[%s4380_s1 + $0x5c0] ss:$16 sps:$4 sm:$0xff]  }
  0x33   : > { %1532 = vmatpush1.bf16.msra.mxu1 %v3054_v47  ;;  %v3130_v47 = vld [vmem:[%s4380_s1 + $0x504] ss:$16 sps:$4 sm:$0xff]   ;;  %v3278_v42 = vld [vmem:[%s4382_s3] ss:$8 sps:$4 sm:$0xff]  }
  0x34   : > { %1575 = vmatpush1.bf16.msra.mxu0 %v3055_v48  ;;  %1533 = vmatprep.subr.bf16.mxu1 %v3056_v53  ;;  %v3133_v48 = vld [vmem:[%s4380_s1 + $0x10c] ss:$16 sps:$4 sm:$0xff]   ;;  %v3134_v53 = vld [vmem:[%s4380_s1 + $0x520] ss:$16 sps:$4 sm:$0xff]  }
  0x35   : > { %1576 = vmatprep.subr.bf16.mxu0 %v3058_v54  ;;  %v3137_v54 = vld [vmem:[%s4380_s1 + $0x128] ss:$16 sps:$4 sm:$0xff]  }
  0x37   : > { %1534 = vmatpush1.bf16.msra.mxu1 %v3060_v56  ;;  %v3142_v56 = vld [vmem:[%s4380_s1 + $0x544] ss:$16 sps:$4 sm:$0xff]  }
  0x38   : > { %1577 = vmatpush1.bf16.msra.mxu0 %v3061_v57  ;;  %1535 = vmatprep.subr.bf16.mxu1 %v3062_v58  ;;  %v3145_v57 = vld [vmem:[%s4380_s1 + $0x14c] ss:$16 sps:$4 sm:$0xff]   ;;  %v3140_v58 = vld [vmem:[%s4380_s1 + $0x540] ss:$16 sps:$4 sm:$0xff]  }
  0x39   : > { %1578 = vmatprep.subr.bf16.mxu0 %v3064_v59  ;;  %v3143_v59 = vld [vmem:[%s4380_s1 + $0x148] ss:$16 sps:$4 sm:$0xff]  }
  0x3b   : > { %1536 = vmatpush1.bf16.msra.mxu1 %v3066_v60  ;;  %v3148_v60 = vld [vmem:[%s4380_s1 + $0x564] ss:$16 sps:$4 sm:$0xff]  }
  0x3c   : > { %1579 = vmatpush1.bf16.msra.mxu0 %v3067_v61  ;;  %1537 = vmatprep.subr.bf16.mxu1 %v3068_v62  ;;  %v3151_v61 = vld [vmem:[%s4380_s1 + $0x16c] ss:$16 sps:$4 sm:$0xff]   ;;  %v3146_v62 = vld [vmem:[%s4380_s1 + $0x560] ss:$16 sps:$4 sm:$0xff]  }
  0x3d   : > { %1580 = vmatprep.subr.bf16.mxu0 %v3070_v63  ;;  %v3149_v63 = vld [vmem:[%s4380_s1 + $0x168] ss:$16 sps:$4 sm:$0xff]  }
  0x3f   : > { %1538 = vmatpush1.bf16.msra.mxu1 %v3072_v0  ;;  %v3154_v0 = vld [vmem:[%s4380_s1 + $0x584] ss:$16 sps:$4 sm:$0xff]  }
  0x40   : > { %1581 = vmatpush1.bf16.msra.mxu0 %v3073_v1  ;;  %1539 = vmatprep.subr.bf16.mxu1 %v3074_v2  ;;  %v3157_v1 = vld [vmem:[%s4380_s1 + $0x18c] ss:$16 sps:$4 sm:$0xff]   ;;  %v3152_v2 = vld [vmem:[%s4380_s1 + $0x580] ss:$16 sps:$4 sm:$0xff]  }
  0x41   : > { %1582 = vmatprep.subr.bf16.mxu0 %v3076_v3  ;;  %v3155_v3 = vld [vmem:[%s4380_s1 + $0x188] ss:$16 sps:$4 sm:$0xff]  }
  0x43   : > { %1540 = vmatpush1.bf16.msra.mxu1 %v3078_v4  ;;  %v3160_v4 = vld [vmem:[%s4380_s1 + $0x5a4] ss:$16 sps:$4 sm:$0xff]  }
  0x44   : > { %1583 = vmatpush1.bf16.msra.mxu0 %v3079_v5  ;;  %1681 = vmatprep.subr.bf16.mxu1 %v3085_v11  ;;  %v3163_v5 = vld [vmem:[%s4380_s1 + $0x1ac] ss:$16 sps:$4 sm:$0xff]   ;;  %v3167_v11 = vld [vmem:[%s4380_s1 + $0x1c8] ss:$16 sps:$4 sm:$0xff]  }
  0x45   : > { %1595 = vmatprep.subr.bf16.mxu0 %v3082_v8  ;;  %v3166_v8 = vld [vmem:[%s4380_s1 + $0x5c4] ss:$16 sps:$4 sm:$0xff]  }
  0x46   : > { %1542 = vmatmul.mubr.bf16.vlgmr.msra.gmra.mrb[0].mxu1 %v3677_v12 }
  0x47   : > { %1585 = vmatmul.mubr.bf16.vlgmr.msra.gmra.mrb[0].mxu0 %v3685_v15  ;;  %1682 = vmatpush1.bf16.msra.mxu1 %v3083_v14  ;;  %v3175_v14 = vld [vmem:[%s4380_s1 + $0x1ec] ss:$16 sps:$4 sm:$0xff]  }
  0x48   : > { %1596 = vmatpush1.bf16.msra.mxu0 %v3080_v13  ;;  %1683 = vmatprep.subr.bf16.mxu1 %v3091_v17  ;;  %v3172_v13 = vld [vmem:[%s4380_s1 + $0x5e4] ss:$16 sps:$4 sm:$0xff]   ;;  %v3173_v17 = vld [vmem:[%s4380_s1 + $0x1e8] ss:$16 sps:$4 sm:$0xff]  }
  0x49   : > { %1597 = vmatprep.subr.bf16.mxu0 %v3088_v16  ;;  %1713 = vmatprep.mubr.bf16.mxu1 %v3611_v50  ;;  %v3131_v50 = vld [vmem:[%s4380_s1 + $0x108] ss:$16 sps:$4 sm:$0xff]   ;;  %v3170_v16 = vld [vmem:[%s4380_s1 + $0x5e0] ss:$16 sps:$4 sm:$0xff]  }
  0x4a   : > { %1627 = vmatprep.mubr.bf16.mxu0 %v3770_v44 }
  0x4b   : > { %1684 = vmatpush1.bf16.msra.mxu1 %v3089_v19  ;;  %v297_v19 = vld [vmem:[%s3595_s10 + $0x58] sm:$0xff] }
  0x4c   : > { %1598 = vmatpush1.bf16.msra.mxu0 %v3086_v18  ;;  %1685 = vmatprep.subr.bf16.mxu1 %v3097_v21  ;;  %v290_v18 = vld [vmem:[%s3595_s10 + $0x20] sm:$0xff] }
  0x4d   : > { %1599 = vmatprep.subr.bf16.mxu0 %v3094_v20  ;;  %v3178_v20 = vld [vmem:[%s4380_s1 + $0x20c] ss:$16 sps:$4 sm:$0xff]   ;;  %v3184_v21 = vld [vmem:[%s4380_s1 + $0x604] ss:$16 sps:$4 sm:$0xff]  }
  0x4f   : > { %1686 = vmatpush1.bf16.msra.mxu1 %v3095_v23  ;;  %v3176_v23 = vld [vmem:[%s4380_s1 + $0x208] ss:$16 sps:$4 sm:$0xff]  }
  0x50   : > { %1600 = vmatpush1.bf16.msra.mxu0 %v3092_v22  ;;  %1687 = vmatprep.subr.bf16.mxu1 %v3103_v25  ;;  %v3883_v22 = vpack.c.bf16 %v297_v19, %v290_v18  ;;  %v3181_v25 = vld [vmem:[%s4380_s1 + $0x22c] ss:$16 sps:$4 sm:$0xff]   ;;  %v3305_v19 = vld [vmem:[%s4382_s3 + $0x90] ss:$8 sps:$4 sm:$0xff]  }
  0x51   : > { %1601 = vmatprep.subr.bf16.mxu0 %v3100_v24  ;;  %v3182_v24 = vld [vmem:[%s4380_s1 + $0x600] ss:$16 sps:$4 sm:$0xff]   ;;  %v3229_v18 = vld [vmem:[%s4380_s1 + $0x40c] ss:$16 sps:$4 sm:$0xff]  }
  0x53   : > { %1688 = vmatpush1.bf16.msra.mxu1 %v3101_v27  ;;  %v3187_v27 = vld [vmem:[%s4380_s1 + $0x24c] ss:$16 sps:$4 sm:$0xff]  }
  0x54   : > { %1602 = vmatpush1.bf16.msra.mxu0 %v3098_v26  ;;  %1689 = vmatprep.subr.bf16.mxu1 %v3109_v29  ;;  %v3179_v26 = vld [vmem:[%s4380_s1 + $0x228] ss:$16 sps:$4 sm:$0xff]   ;;  %v3274_v29 = vld [vmem:[%s4380_s1 + $0x60c] ss:$16 sps:$4 sm:$0xff]  }
  0x55   : > { %1603 = vmatprep.subr.bf16.mxu0 %v3106_v28  ;;  %v3406_v28 = vmov 0  }
  0x57   : > { %1690 = vmatpush1.bf16.msra.mxu1 %v3107_v31  ;;  %v299_v31 = vld [vmem:[%s3595_s10 + $0x68] sm:$0xff] }
  0x58   : > { %1604 = vmatpush1.bf16.msra.mxu0 %v3104_v30  ;;  %1691 = vmatprep.subr.bf16.mxu1 %v3115_v33  ;;  %v292_v30 = vld [vmem:[%s3595_s10 + $0x30] sm:$0xff]  ;;  %v3188_v33 = vld [vmem:[%s4380_s1 + $0x268] ss:$16 sps:$4 sm:$0xff]  }
  0x59   : > { %1605 = vmatprep.subr.bf16.mxu0 %v3112_v32  ;;  %v3190_v32 = vld [vmem:[%s4380_s1 + $0x26c] ss:$16 sps:$4 sm:$0xff]  }
  0x5b   : > { %1692 = vmatpush1.bf16.msra.mxu1 %v3113_v35  ;;  %v306_v35 = vpack.c.bf16 %v299_v31, %v292_v30  ;;  %v3319_v30 = vld [vmem:[%s4382_s3 + $0xd4] ss:$8 sps:$4 sm:$0xff]   ;;  %v3236_v31 = vld [vmem:[%s4380_s1 + $0x468] ss:$16 sps:$4 sm:$0xff]  }
  0x5c   : > { %1606 = vmatpush1.bf16.msra.mxu0 %v3110_v34  ;;  %1693 = vmatprep.subr.bf16.mxu1 %v3121_v37  ;;  %v3272_v34 = vld [vmem:[%s4380_s1 + $0x608] ss:$16 sps:$4 sm:$0xff]   ;;  %v3196_v37 = vld [vmem:[%s4380_s1 + $0x2ac] ss:$16 sps:$4 sm:$0xff]  }
  0x5d   : > { %1607 = vmatprep.subr.bf16.mxu0 %v3118_v36  ;;  %v3191_v36 = vld [vmem:[%s4380_s1 + $0x288] ss:$16 sps:$4 sm:$0xff]  }
  0x5f   : > { %1694 = vmatpush1.bf16.msra.mxu1 %v3119_v39  ;;  %v3199_v39 = vld [vmem:[%s4380_s1 + $0x2cc] ss:$16 sps:$4 sm:$0xff]  }
  0x60   : > { %1608 = vmatpush1.bf16.msra.mxu0 %v3116_v38  ;;  %1695 = vmatprep.subr.bf16.mxu1 %v3127_v43  ;;  %v3194_v38 = vld [vmem:[%s4380_s1 + $0x2a8] ss:$16 sps:$4 sm:$0xff]   ;;  %v3280_v43 = vld [vmem:[%s4382_s3 + $0x4] ss:$8 sps:$4 sm:$0xff]  }
  0x61   : > { %1609 = vmatprep.subr.bf16.mxu0 %v3124_v40  ;;  %v3197_v40 = vld [vmem:[%s4380_s1 + $0x2c8] ss:$16 sps:$4 sm:$0xff]  }
  0x63   : > { %1696 = vmatpush1.bf16.msra.mxu1 %v3125_v46  ;;  %v3200_v46 = vld [vmem:[%s4380_s1 + $0x2e8] ss:$16 sps:$4 sm:$0xff]  }
  0x64   : > { %1610 = vmatpush1.bf16.msra.mxu0 %v3122_v45  ;;  %1697 = vmatprep.subr.bf16.mxu1 %v3133_v48  ;;  %v3283_v45 = vld [vmem:[%s4382_s3 + $0x14] ss:$8 sps:$4 sm:$0xff]   ;;  %v3281_v48 = vld [vmem:[%s4382_s3 + $0x10] ss:$8 sps:$4 sm:$0xff]  }
  0x65   : > { %1611 = vmatprep.subr.bf16.mxu0 %v3130_v47  ;;  %v3205_v47 = vld [vmem:[%s4380_s1 + $0x30c] ss:$16 sps:$4 sm:$0xff]  }
  0x67   : > { %1698 = vmatpush1.bf16.msra.mxu1 %v3131_v50  ;;  %v3203_v50 = vld [vmem:[%s4380_s1 + $0x308] ss:$16 sps:$4 sm:$0xff]  }
  0x68   : > { %1612 = vmatpush1.bf16.msra.mxu0 %v3128_v49  ;;  %1699 = vmatprep.subr.bf16.mxu1 %v3139_v52  ;;  %v3286_v49 = vld [vmem:[%s4382_s3 + $0x24] ss:$8 sps:$4 sm:$0xff]   ;;  %v3284_v52 = vld [vmem:[%s4382_s3 + $0x20] ss:$8 sps:$4 sm:$0xff]  }
  0x69   : > { %1613 = vmatprep.subr.bf16.mxu0 %v3136_v51  ;;  %v3208_v51 = vld [vmem:[%s4380_s1 + $0x32c] ss:$16 sps:$4 sm:$0xff]  }
  0x6b   : > { %1700 = vmatpush1.bf16.msra.mxu1 %v3137_v54  ;;  %v3289_v54 = vld [vmem:[%s4382_s3 + $0x34] ss:$8 sps:$4 sm:$0xff]  }
  0x6c   : > { %1614 = vmatpush1.bf16.msra.mxu0 %v3134_v53  ;;  %1701 = vmatprep.subr.bf16.mxu1 %v3145_v57  ;;  %v3206_v53 = vld [vmem:[%s4380_s1 + $0x328] ss:$16 sps:$4 sm:$0xff]  }
  0x6d   : > { %1615 = vmatprep.subr.bf16.mxu0 %v3142_v56  ;;  %v3211_v56 = vld [vmem:[%s4380_s1 + $0x34c] ss:$16 sps:$4 sm:$0xff]   ;;  %v3287_v57 = vld [vmem:[%s4382_s3 + $0x30] ss:$8 sps:$4 sm:$0xff]  }
  0x6f   : > { %1702 = vmatpush1.bf16.msra.mxu1 %v3143_v59  ;;  %v3209_v59 = vld [vmem:[%s4380_s1 + $0x348] ss:$16 sps:$4 sm:$0xff]  }
  0x70   : > { %1616 = vmatpush1.bf16.msra.mxu0 %v3140_v58  ;;  %1703 = vmatprep.subr.bf16.mxu1 %v3151_v61  ;;  %v3292_v58 = vld [vmem:[%s4382_s3 + $0x44] ss:$8 sps:$4 sm:$0xff]   ;;  %v3290_v61 = vld [vmem:[%s4382_s3 + $0x40] ss:$8 sps:$4 sm:$0xff]  }
  0x71   : > { %1617 = vmatprep.subr.bf16.mxu0 %v3148_v60  ;;  %v3214_v60 = vld [vmem:[%s4380_s1 + $0x36c] ss:$16 sps:$4 sm:$0xff]  }
  0x73   : > { %1704 = vmatpush1.bf16.msra.mxu1 %v3149_v63  ;;  %v3212_v63 = vld [vmem:[%s4380_s1 + $0x368] ss:$16 sps:$4 sm:$0xff]  }
  0x74   : > { %1618 = vmatpush1.bf16.msra.mxu0 %v3146_v62  ;;  %1705 = vmatprep.subr.bf16.mxu1 %v3157_v1  ;;  %v3295_v62 = vld [vmem:[%s4382_s3 + $0x54] ss:$8 sps:$4 sm:$0xff]   ;;  %v3293_v1 = vld [vmem:[%s4382_s3 + $0x50] ss:$8 sps:$4 sm:$0xff]  }
  0x75   : > { %1619 = vmatprep.subr.bf16.mxu0 %v3154_v0  ;;  %v3217_v0 = vld [vmem:[%s4380_s1 + $0x38c] ss:$16 sps:$4 sm:$0xff]  }
  0x77   : > { %1706 = vmatpush1.bf16.msra.mxu1 %v3155_v3  ;;  %v3215_v3 = vld [vmem:[%s4380_s1 + $0x388] ss:$16 sps:$4 sm:$0xff]  }
  0x78   : > { %1620 = vmatpush1.bf16.msra.mxu0 %v3152_v2  ;;  %1707 = vmatprep.subr.bf16.mxu1 %v3163_v5  ;;  %v3298_v2 = vld [vmem:[%s4382_s3 + $0x64] ss:$8 sps:$4 sm:$0xff]   ;;  %v3296_v5 = vld [vmem:[%s4382_s3 + $0x60] ss:$8 sps:$4 sm:$0xff]  }
  0x79   : > { %1621 = vmatprep.subr.bf16.mxu0 %v3160_v4  ;;  %v3220_v4 = vld [vmem:[%s4380_s1 + $0x3ac] ss:$16 sps:$4 sm:$0xff]  }
  0x7b   : > { %1708 = vmatpush1.bf16.msra.mxu1 %v3161_v7  ;;  %v3218_v7 = vld [vmem:[%s4380_s1 + $0x3a8] ss:$16 sps:$4 sm:$0xff]  }
  0x7c   : > { %1622 = vmatpush1.bf16.msra.mxu0 %v3158_v6  ;;  %1709 = vmatprep.subr.bf16.mxu1 %v3169_v9  ;;  %v3301_v6 = vld [vmem:[%s4382_s3 + $0x74] ss:$8 sps:$4 sm:$0xff]   ;;  %v3299_v9 = vld [vmem:[%s4382_s3 + $0x70] ss:$8 sps:$4 sm:$0xff]  }
  0x7d   : > { %1623 = vmatprep.subr.bf16.mxu0 %v3166_v8  ;;  %v3223_v8 = vld [vmem:[%s4380_s1 + $0x3cc] ss:$16 sps:$4 sm:$0xff]  }
  0x7f   : > { %1710 = vmatpush1.bf16.msra.mxu1 %v3167_v11  ;;  %v3221_v11 = vld [vmem:[%s4380_s1 + $0x3c8] ss:$16 sps:$4 sm:$0xff]  }
  0x80   : > { %1624 = vmatpush1.bf16.msra.mxu0 %v3164_v10  ;;  %1711 = vmatprep.subr.bf16.mxu1 %v3175_v14  ;;  %v3304_v10 = vld [vmem:[%s4382_s3 + $0x84] ss:$8 sps:$4 sm:$0xff]   ;;  %v3302_v14 = vld [vmem:[%s4382_s3 + $0x80] ss:$8 sps:$4 sm:$0xff]  }
  0x81   : > { %1625 = vmatprep.subr.bf16.mxu0 %v3172_v13  ;;  %v3226_v13 = vld [vmem:[%s4380_s1 + $0x3ec] ss:$16 sps:$4 sm:$0xff]  }
  0x83   : > { %1712 = vmatpush1.bf16.msra.mxu1 %v3173_v17  ;;  %v3224_v17 = vld [vmem:[%s4380_s1 + $0x3e8] ss:$16 sps:$4 sm:$0xff]  }
  0x84   : > { %1626 = vmatpush1.bf16.msra.mxu0 %v3170_v16  ;;  %1724 = vmatprep.subr.bf16.mxu1 %v3178_v20  ;;  %v3307_v16 = vld [vmem:[%s4382_s3 + $0x94] ss:$8 sps:$4 sm:$0xff]   ;;  %v3310_v20 = vld [vmem:[%s4382_s3 + $0xa4] ss:$8 sps:$4 sm:$0xff]  }
  0x85   : > { %1638 = vmatprep.subr.bf16.mxu0 %v3184_v21  ;;  %v3227_v21 = vld [vmem:[%s4380_s1 + $0x408] ss:$16 sps:$4 sm:$0xff]  }
  0x86   : > { %1714 = vmatmul.mubr.bf16.vlgmr.msra.gmra.mrb[4].mxu1 %v3677_v12  ;;  %v3185_v12 = vld [vmem:[%s4380_s1 + $0x248] ss:$16 sps:$4 sm:$0xff]  }
  0x87   : > { %1628 = vmatmul.mubr.bf16.vlgmr.msra.gmra.mrb[0].mxu0 %v3883_v22  ;;  %1725 = vmatpush1.bf16.msra.mxu1 %v3176_v23  ;;  %v3232_v23 = vld [vmem:[%s4380_s1 + $0x42c] ss:$16 sps:$4 sm:$0xff]  }
  0x88   : > { %1639 = vmatpush1.bf16.msra.mxu0 %v3182_v24  ;;  %1726 = vmatprep.subr.bf16.mxu1 %v3181_v25  ;;  %v3308_v24 = vld [vmem:[%s4382_s3 + $0xa0] ss:$8 sps:$4 sm:$0xff]   ;;  %v3313_v25 = vld [vmem:[%s4382_s3 + $0xb4] ss:$8 sps:$4 sm:$0xff]  }
  0x89   : > { %1670 = vmatprep.mubr.bf16.mxu0 %v3406_v28  ;;  %1756 = vmatprep.mubr.bf16.mxu1 %v3621_v55  ;;  %v3193_v55 = vld [vmem:[%s4380_s1 + $0x28c] ss:$16 sps:$4 sm:$0xff]  }
  0x8a   : > { %1810 = vmatprep.subr.bf16.mxu0 %v3274_v29  ;;  %v3238_v29 = vld [vmem:[%s4380_s1 + $0x46c] ss:$16 sps:$4 sm:$0xff]  }
  0x8b   : > { %1727 = vmatpush1.bf16.msra.mxu1 %v3179_v26  ;;  %v3230_v26 = vld [vmem:[%s4380_s1 + $0x428] ss:$16 sps:$4 sm:$0xff]  }
  0x8c   : > { %1728 = vmatprep.subr.bf16.mxu1 %v3187_v27  ;;  %v3235_v27 = vld [vmem:[%s4380_s1 + $0x44c] ss:$16 sps:$4 sm:$0xff]  }
  0x8f   : > { %1729 = vmatpush1.bf16.msra.mxu1 %v3185_v12  ;;  %v3314_v12 = vld [vmem:[%s4382_s3 + $0xc0] ss:$8 sps:$4 sm:$0xff]  }
  0x90   : > { %1730 = vmatprep.subr.bf16.mxu1 %v3190_v32  ;;  %v3241_v32 = vld [vmem:[%s4380_s1 + $0x48c] ss:$16 sps:$4 sm:$0xff]  }
  0x93   : > { %2818 = vmatmul.mubr.msk.bf16.vlgmr.msra.gmra.mrb[0].mxu0 %vm1505_vm0, %v306_v35  ;;  %1731 = vmatpush1.bf16.msra.mxu1 %v3188_v33  ;;  %v3317_v33 = vld [vmem:[%s4382_s3 + $0xd0] ss:$8 sps:$4 sm:$0xff]  }
  0x94   : > { %1811 = vmatpush1.bf16.msra.mxu0 %v3272_v34  ;;  %1732 = vmatprep.subr.bf16.mxu1 %v3193_v55  ;;  %v3239_v34 = vld [vmem:[%s4380_s1 + $0x488] ss:$16 sps:$4 sm:$0xff]  }
  0x95   : > { %1842 = vmatprep.mubr.bf16.mxu0 %v3406_v28  ;;  %2261 = vmatprep.subr.bf16.mxu0 %v3280_v43  ;;  %v3311_v28 = vld [vmem:[%s4382_s3 + $0xb0] ss:$8 sps:$4 sm:$0xff]   ;;  %v3322_v43 = vld [vmem:[%s4382_s3 + $0xe4] ss:$8 sps:$4 sm:$0xff]  }
  0x96   : > { %v3242_v55 = vld [vmem:[%s4380_s1 + $0x4a8] ss:$16 sps:$4 sm:$0xff]  }
  0x97   : > { %1733 = vmatpush1.bf16.msra.mxu1 %v3191_v36  ;;  %v3247_v36 = vld [vmem:[%s4380_s1 + $0x4cc] ss:$16 sps:$4 sm:$0xff]  }
  0x98   : > { %1734 = vmatprep.subr.bf16.mxu1 %v3196_v37  ;;  %v3245_v37 = vld [vmem:[%s4380_s1 + $0x4c8] ss:$16 sps:$4 sm:$0xff]  }
  0x9b   : > { %2819 = vmatmul.mubr.msk.bf16.vlgmr.msra.gmra.mrb[4].mxu0 %vm1505_vm0, %v306_v35  ;;  %1735 = vmatpush1.bf16.msra.mxu1 %v3194_v38  ;;  %v3244_v35 = vld [vmem:[%s4380_s1 + $0x4ac] ss:$16 sps:$4 sm:$0xff]  }
  0x9c   : > { %1736 = vmatprep.subr.bf16.mxu1 %v3199_v39  ;;  %2262 = vmatpush1.bf16.msra.mxu0 %v3278_v42  ;;  %v3250_v38 = vld [vmem:[%s4380_s1 + $0x4ec] ss:$16 sps:$4 sm:$0xff]   ;;  %v3248_v39 = vld [vmem:[%s4380_s1 + $0x4e8] ss:$16 sps:$4 sm:$0xff]  }
  0x9d   : > { %2263 = vmatprep.subr.bf16.mxu0 %v3283_v45  ;;  %v3256_v42 = vld [vmem:[%s4380_s1 + $0x52c] ss:$16 sps:$4 sm:$0xff]   ;;  %v3254_v45 = vld [vmem:[%s4380_s1 + $0x528] ss:$16 sps:$4 sm:$0xff]  }
  0x9f   : > { %1737 = vmatpush1.bf16.msra.mxu1 %v3197_v40  ;;  %v3253_v40 = vld [vmem:[%s4380_s1 + $0x50c] ss:$16 sps:$4 sm:$0xff]  }
  0xa0   : > { %1738 = vmatprep.subr.bf16.mxu1 %v3202_v41  ;;  %2264 = vmatpush1.bf16.msra.mxu0 %v3281_v48  ;;  %v3251_v41 = vld [vmem:[%s4380_s1 + $0x508] ss:$16 sps:$4 sm:$0xff]   ;;  %v3325_v48 = vld [vmem:[%s4382_s3 + $0xf4] ss:$8 sps:$4 sm:$0xff]  }
  0xa1   : > { %2265 = vmatprep.subr.bf16.mxu0 %v3286_v49  ;;  %v3257_v49 = vld [vmem:[%s4380_s1 + $0x548] ss:$16 sps:$4 sm:$0xff]  }
  0xa3   : > { %1739 = vmatpush1.bf16.msra.mxu1 %v3200_v46  ;;  %v3320_v46 = vld [vmem:[%s4382_s3 + $0xe0] ss:$8 sps:$4 sm:$0xff]  }
  0xa4   : > { %1740 = vmatprep.subr.bf16.mxu1 %v3205_v47  ;;  %2266 = vmatpush1.bf16.msra.mxu0 %v3284_v52  ;;  %v3259_v47 = vld [vmem:[%s4380_s1 + $0x54c] ss:$16 sps:$4 sm:$0xff]   ;;  %v3260_v52 = vld [vmem:[%s4380_s1 + $0x568] ss:$16 sps:$4 sm:$0xff]  }
  0xa5   : > { %2267 = vmatprep.subr.bf16.mxu0 %v3289_v54  ;;  %v3328_v54 = vld [vmem:[%s4382_s3 + $0x104] ss:$8 sps:$4 sm:$0xff]  }
  0xa7   : > { %1741 = vmatpush1.bf16.msra.mxu1 %v3203_v50  ;;  %v3323_v50 = vld [vmem:[%s4382_s3 + $0xf0] ss:$8 sps:$4 sm:$0xff]  }
  0xa8   : > { %1742 = vmatprep.subr.bf16.mxu1 %v3208_v51  ;;  %2268 = vmatpush1.bf16.msra.mxu0 %v3287_v57  ;;  %v3262_v51 = vld [vmem:[%s4380_s1 + $0x56c] ss:$16 sps:$4 sm:$0xff]  }
  0xa9   : > { %2269 = vmatprep.subr.bf16.mxu0 %v3292_v58  ;;  %v3268_v57 = vld [vmem:[%s4380_s1 + $0x5ac] ss:$16 sps:$4 sm:$0xff]   ;;  %v3266_v58 = vld [vmem:[%s4380_s1 + $0x5a8] ss:$16 sps:$4 sm:$0xff]  }
  0xab   : > { %1743 = vmatpush1.bf16.msra.mxu1 %v3206_v53  ;;  %v3265_v53 = vld [vmem:[%s4380_s1 + $0x58c] ss:$16 sps:$4 sm:$0xff]  }
  0xac   : > { %1744 = vmatprep.subr.bf16.mxu1 %v3211_v56  ;;  %2270 = vmatpush1.bf16.msra.mxu0 %v3290_v61  ;;  %v3263_v56 = vld [vmem:[%s4380_s1 + $0x588] ss:$16 sps:$4 sm:$0xff]   ;;  %v3277_v61 = vld [vmem:[%s4380_s1 + $0x5ec] ss:$16 sps:$4 sm:$0xff]  }
  0xad   : > { %2271 = vmatprep.subr.bf16.mxu0 %v3295_v62  ;;  %v3275_v62 = vld [vmem:[%s4380_s1 + $0x5e8] ss:$16 sps:$4 sm:$0xff]  }
  0xaf   : > { %1745 = vmatpush1.bf16.msra.mxu1 %v3209_v59  ;;  %v3271_v59 = vld [vmem:[%s4380_s1 + $0x5cc] ss:$16 sps:$4 sm:$0xff]  }
  0xb0   : > { %1746 = vmatprep.subr.bf16.mxu1 %v3214_v60  ;;  %2272 = vmatpush1.bf16.msra.mxu0 %v3293_v1  ;;  %v3269_v60 = vld [vmem:[%s4380_s1 + $0x5c8] ss:$16 sps:$4 sm:$0xff]  }
  0xb1   : > { %2273 = vmatprep.subr.bf16.mxu0 %v3298_v2 }
  0xb3   : > { %1747 = vmatpush1.bf16.msra.mxu1 %v3212_v63 }
  0xb4   : > { %1748 = vmatprep.subr.bf16.mxu1 %v3217_v0  ;;  %2274 = vmatpush1.bf16.msra.mxu0 %v3296_v5 }
  0xb5   : > { %2275 = vmatprep.subr.bf16.mxu0 %v3301_v6  ;;  %v4196_v6 = vld [vmem:[%s4381_s2] sm:$0xf] }
  0xb7   : > { %1749 = vmatpush1.bf16.msra.mxu1 %v3215_v3  ;;  %v505_v3 = vlaneseq }
  0xb8   : > { %1750 = vmatprep.subr.bf16.mxu1 %v3220_v4  ;;  %2276 = vmatpush1.bf16.msra.mxu0 %v3299_v9 }
  0xb9   : > { %2277 = vmatprep.subr.bf16.mxu0 %v3304_v10  ;;  %v4190_v4 = vshrl.u32 %v505_v3, 7  ;;  %v3362_v3 = vld [vmem:[%s4382_s3 + $0x1c0] ss:$8 sps:$4 sm:$0xff]  }
  0xbb   : > { %1751 = vmatpush1.bf16.msra.mxu1 %v3218_v7  ;;  %v507_v5 = vsub.s32 0, %v4190_v4  ;;  %v511_v7 = vsub.s32 1, %v4190_v4 }
  0xbc   : > { %1752 = vmatprep.subr.bf16.mxu1 %v3223_v8  ;;  %2278 = vmatpush1.bf16.msra.mxu0 %v3302_v14 }
  0xbd   : > { %2279 = vmatprep.subr.bf16.mxu0 %v3307_v16  ;;  %v512_v8 = vrot.slane %v4196_v6, %v511_v7 }
  0xbf   : > { %1753 = vmatpush1.bf16.msra.mxu1 %v3221_v11 }
  0xc0   : > { %1754 = vmatprep.subr.bf16.mxu1 %v3226_v13  ;;  %2280 = vmatpush1.bf16.msra.mxu0 %v3305_v19  ;;  %v3376_v19 = vld [vmem:[%s4384_s5 + $0x48] sm:$0xff]  }
  0xc1   : > { %2281 = vmatprep.subr.bf16.mxu0 %v3310_v20 }
  0xc3   : > { %1755 = vmatpush1.bf16.msra.mxu1 %v3224_v17  ;;  %v3374_v17 = vld [vmem:[%s4384_s5 + $0x40] sm:$0xff]  }
  0xc4   : > { %1767 = vmatprep.subr.bf16.mxu1 %v3229_v18  ;;  %2282 = vmatpush1.bf16.msra.mxu0 %v3308_v24  ;;  %v3375_v18 = vld [vmem:[%s4384_s5] sm:$0xff]  }
  0xc5   : > { %2283 = vmatprep.subr.bf16.mxu0 %v3313_v25 }
  0xc6   : > { %1757 = vmatmul.mubr.bf16.vlgmr.msra.gmra.mrb[4].mxu1 %v3685_v15  ;;  %v3316_v15 = vld [vmem:[%s4382_s3 + $0xc4] ss:$8 sps:$4 sm:$0xff]  }
  0xc7   : > { %1768 = vmatpush1.bf16.msra.mxu1 %v3227_v21  ;;  %1799 = vmatprep.mubr.bf16.mxu1 %v3770_v44  ;;  %v3233_v44 = vld [vmem:[%s4380_s1 + $0x448] ss:$16 sps:$4 sm:$0xff]  }
  0xc8   : > { %1769 = vmatprep.subr.bf16.mxu1 %v3232_v23  ;;  %2284 = vmatpush1.bf16.msra.mxu0 %v3311_v28 }
  0xc9   : > { %2285 = vmatprep.subr.bf16.mxu0 %v3316_v15 }
  0xcb   : > { %1770 = vmatpush1.bf16.msra.mxu1 %v3230_v26 }
  0xcc   : > { %1771 = vmatprep.subr.bf16.mxu1 %v3235_v27  ;;  %2286 = vmatpush1.bf16.msra.mxu0 %v3314_v12  ;;  %v3377_v27 = vld [vmem:[%s4384_s5 + $0x8] sm:$0xff]  }
  0xcd   : > { %2287 = vmatprep.subr.bf16.mxu0 %v3319_v30 }
  0xcf   : > { %1772 = vmatpush1.bf16.msra.mxu1 %v3233_v44  ;;  %v3378_v44 = vld [vmem:[%s4384_s5 + $0x50] sm:$0xff]  }
  0xd0   : > { %1773 = vmatprep.subr.bf16.mxu1 %v3238_v29  ;;  %2288 = vmatpush1.bf16.msra.mxu0 %v3317_v33 }
  0xd1   : > { %2289 = vmatprep.subr.bf16.mxu0 %v3322_v43  ;;  %v3332_v43 = vld [vmem:[%s4382_s3 + $0x120] ss:$8 sps:$4 sm:$0xff]  }
  0xd3   : > { %1774 = vmatpush1.bf16.msra.mxu1 %v3236_v31 }
  0xd4   : > { %1775 = vmatprep.subr.bf16.mxu1 %v3241_v32  ;;  %2290 = vmatpush1.bf16.msra.mxu0 %v3320_v46  ;;  %v3326_v32 = vld [vmem:[%s4382_s3 + $0x100] ss:$8 sps:$4 sm:$0xff]   ;;  %v3337_v46 = vld [vmem:[%s4382_s3 + $0x134] ss:$8 sps:$4 sm:$0xff]  }
  0xd5   : > { %2291 = vmatprep.subr.bf16.mxu0 %v3325_v48  ;;  %v3335_v48 = vld [vmem:[%s4382_s3 + $0x130] ss:$8 sps:$4 sm:$0xff]  }
  0xd7   : > { %1776 = vmatpush1.bf16.msra.mxu1 %v3239_v34  ;;  %v3379_v34 = vld [vmem:[%s4384_s5 + $0x10] sm:$0xff]  }
  0xd8   : > { %1777 = vmatprep.subr.bf16.mxu1 %v3244_v35  ;;  %2292 = vmatpush1.bf16.msra.mxu0 %v3323_v50  ;;  %v3331_v35 = vld [vmem:[%s4382_s3 + $0x114] ss:$8 sps:$4 sm:$0xff]   ;;  %v3338_v50 = vld [vmem:[%s4382_s3 + $0x140] ss:$8 sps:$4 sm:$0xff]  }
  0xd9   : > { %2304 = vmatprep.subr.bf16.mxu0 %v3328_v54  ;;  %v3344_v54 = vld [vmem:[%s4382_s3 + $0x160] ss:$8 sps:$4 sm:$0xff]  }
  0xdb   : > { %1778 = vmatpush1.bf16.msra.mxu1 %v3242_v55 }
  0xdc   : > { %1779 = vmatprep.subr.bf16.mxu1 %v3247_v36  ;;  %v3380_v36 = vld [vmem:[%s4384_s5 + $0x58] sm:$0xff]  }
  0xdf   : > { %1780 = vmatpush1.bf16.msra.mxu1 %v3245_v37 }
  0xe0   : > { %1781 = vmatprep.subr.bf16.mxu1 %v3250_v38 }
  0xe3   : > { %1782 = vmatpush1.bf16.msra.mxu1 %v3248_v39  ;;  %v3329_v39 = vld [vmem:[%s4382_s3 + $0x110] ss:$8 sps:$4 sm:$0xff]  }
  0xe4   : > { %1783 = vmatprep.subr.bf16.mxu1 %v3253_v40  ;;  %v3381_v40 = vld [vmem:[%s4384_s5 + $0x18] sm:$0xff]  }
  0xe7   : > { %1784 = vmatpush1.bf16.msra.mxu1 %v3251_v41  ;;  %v3334_v41 = vld [vmem:[%s4382_s3 + $0x124] ss:$8 sps:$4 sm:$0xff]  }
  0xe8   : > { %1785 = vmatprep.subr.bf16.mxu1 %v3256_v42  ;;  %v3382_v42 = vld [vmem:[%s4384_s5 + $0x60] sm:$0xff]  }
  0xeb   : > { %1786 = vmatpush1.bf16.msra.mxu1 %v3254_v45  ;;  %v3383_v45 = vld [vmem:[%s4384_s5 + $0x20] sm:$0xff]  }
  0xec   : > { %1787 = vmatprep.subr.bf16.mxu1 %v3259_v47  ;;  %v3384_v47 = vld [vmem:[%s4384_s5 + $0x68] sm:$0xff]  }
  0xef   : > { %1788 = vmatpush1.bf16.msra.mxu1 %v3257_v49  ;;  %v3340_v49 = vld [vmem:[%s4382_s3 + $0x144] ss:$8 sps:$4 sm:$0xff]  }
  0xf0   : > { %1789 = vmatprep.subr.bf16.mxu1 %v3262_v51  ;;  %v3343_v51 = vld [vmem:[%s4382_s3 + $0x154] ss:$8 sps:$4 sm:$0xff]  }
  0xf3   : > { %1790 = vmatpush1.bf16.msra.mxu1 %v3260_v52  ;;  %v3341_v52 = vld [vmem:[%s4382_s3 + $0x150] ss:$8 sps:$4 sm:$0xff]  }
  0xf4   : > { %1791 = vmatprep.subr.bf16.mxu1 %v3265_v53  ;;  %v3346_v53 = vld [vmem:[%s4382_s3 + $0x164] ss:$8 sps:$4 sm:$0xff]  }
  0xf7   : > { %1792 = vmatpush1.bf16.msra.mxu1 %v3263_v56  ;;  %v3349_v56 = vld [vmem:[%s4382_s3 + $0x174] ss:$8 sps:$4 sm:$0xff]  }
  0xf8   : > { %1793 = vmatprep.subr.bf16.mxu1 %v3268_v57  ;;  %v3347_v57 = vld [vmem:[%s4382_s3 + $0x170] ss:$8 sps:$4 sm:$0xff]  }
  0xfb   : > { %1794 = vmatpush1.bf16.msra.mxu1 %v3266_v58  ;;  %v3352_v58 = vld [vmem:[%s4382_s3 + $0x184] ss:$8 sps:$4 sm:$0xff]  }
  0xfc   : > { %1795 = vmatprep.subr.bf16.mxu1 %v3271_v59  ;;  %v3350_v59 = vld [vmem:[%s4382_s3 + $0x180] ss:$8 sps:$4 sm:$0xff]  }
  0xff   : > { %1796 = vmatpush1.bf16.msra.mxu1 %v3269_v60  ;;  %v3355_v60 = vld [vmem:[%s4382_s3 + $0x194] ss:$8 sps:$4 sm:$0xff]  }
 0x100   : > { %1797 = vmatprep.subr.bf16.mxu1 %v3277_v61  ;;  %v3353_v61 = vld [vmem:[%s4382_s3 + $0x190] ss:$8 sps:$4 sm:$0xff]  }
 0x103   : > { %1798 = vmatpush1.bf16.msra.mxu1 %v3275_v62  ;;  %v3358_v62 = vld [vmem:[%s4382_s3 + $0x1a4] ss:$8 sps:$4 sm:$0xff]  }
 0x104   : > { %2912 = vmatprep.subr.bf16.mxu1 %v3374_v17 }
 0x106   : > { %1800 = vmatmul.mubr.bf16.vlgmr.msra.gmra.mrb[4].mxu1 %v3883_v22  ;;  %v508_v22 = vrot.slane %v4196_v6, %v507_v5 }
 0x107   : > { %2913 = vmatpush3.bf16.msra.mxu1 %v3375_v18 }
 0x108   : > { %2914 = vmatprep.subr.bf16.mxu1 %v3376_v19 }
 0x10b   : > { %2915 = vmatpush3.bf16.msra.mxu1 %v3377_v27 }
 0x10c   : > { %2916 = vmatprep.subr.bf16.mxu1 %v3378_v44 }
 0x10f   : > { %2917 = vmatpush3.bf16.msra.mxu1 %v3379_v34 }
 0x110   : > { %2918 = vmatprep.subr.bf16.mxu1 %v3380_v36  ;;  %v3388_v36 = vld [vmem:[%s4384_s5 + $0x78] sm:$0xff]  }
 0x113   : > { %2919 = vmatpush3.bf16.msra.mxu1 %v3381_v40 }
 0x114   : > { %2920 = vmatprep.subr.bf16.mxu1 %v3382_v42 }
 0x117   : > { %2921 = vmatpush3.bf16.msra.mxu1 %v3383_v45 }
 0x118   : > { %2922 = vmatprep.subr.bf16.mxu1 %v3384_v47 }
 0x119   : > { %v1543_v63 = vpop.f32.mrb[0].mxu1 }
 0x11a   : > { %v1545_v0 = vpop.f32.mrb[1].mxu1  ;;  %v1544_v9 = vadd.f32 %v1543_v63, %v508_v22  ;;  %v3356_v63 = vld [vmem:[%s4382_s3 + $0x1a0] ss:$8 sps:$4 sm:$0xff]  }
 0x11b   : > { %v1547_v1 = vpop.f32.mrb[2].mxu1  ;;  %v1546_v10 = vadd.f32 %v1545_v0, %v512_v8  ;;  %v3361_v0 = vld [vmem:[%s4382_s3 + $0x1b4] ss:$8 sps:$4 sm:$0xff]  }
 0x11c   : > { %v1549_v2 = vpop.f32.mrb[3].mxu1  ;;  %v1548_v13 = vadd.f32 %v1547_v1, %v508_v22  ;;  %v3359_v1 = vld [vmem:[%s4382_s3 + $0x1b0] ss:$8 sps:$4 sm:$0xff]   ;;  %v3367_v22 = vld [vmem:[%s4382_s3 + $0x1d4] ss:$8 sps:$4 sm:$0xff]  }
 0x11d   : > { %v1550_v20 = vadd.f32 %v1549_v2, %v512_v8  ;;  %v3364_v2 = vld [vmem:[%s4382_s3 + $0x1c4] ss:$8 sps:$4 sm:$0xff]   ;;  %v3365_v8 = vld [vmem:[%s4382_s3 + $0x1d0] ss:$8 sps:$4 sm:$0xff]  }
 0x166   : > { %v1672_v11 = vpop.f32.mrb[0].mxu0 }
 0x167   : > { %v2935_v14 = vadd.f32 %v1672_v11, %v1544_v9  ;;  %v1674_v16 = vpop.f32.mrb[1].mxu0  ;;  %v3370_v9 = vld [vmem:[%s4382_s3 + $0x1e4] ss:$8 sps:$4 sm:$0xff]   ;;  %v3373_v11 = vld [vmem:[%s4382_s3 + $0x1f4] ss:$8 sps:$4 sm:$0xff]  }
 0x168   : > { %v2937_v21 = vadd.f32 %v1674_v16, %v1546_v10  ;;  %v1676_v23 = vpop.f32.mrb[2].mxu0  ;;  %v3368_v10 = vld [vmem:[%s4382_s3 + $0x1e0] ss:$8 sps:$4 sm:$0xff]   ;;  %v519_v16 = vsub.s32 3, %v4190_v4 }
 0x169   : > { %v2939_v24 = vadd.f32 %v1676_v23, %v1548_v13  ;;  %v1678_v25 = vpop.f32.mrb[3].mxu0  ;;  %v1853_v28 = vmax.f32 %v2935_v14, 0.0  ;;  %v3371_v13 = vld [vmem:[%s4382_s3 + $0x1f0] ss:$8 sps:$4 sm:$0xff]   ;;  %v515_v14 = vsub.s32 2, %v4190_v4 }
 0x16a   : > { %v2941_v26 = vadd.f32 %v1678_v25, %v1550_v20  ;;  %v1854_v29 = vmax.f32 %v2937_v21, 0.0  ;;  %v520_v18 = vrot.slane %v4196_v6, %v519_v16  ;;  %v2884_v4 = vld [vmem:[%s4385_s6] ss:$0 sm:$0xff] }
 0x16b   : > { %v1857_v15 = vmax.f32 %v2939_v24, 0.0  ;;  %v516_v17 = vrot.slane %v4196_v6, %v515_v14 }
 0x16c   : > { %v1858_v12 = vmax.f32 %v2941_v26, 0.0 }
 0x16d   : > { %v1861_v30 = vpack.c.bf16 %v1857_v15, %v1853_v28 }
 0x16e   : > { %v1862_v31 = vpack.c.bf16 %v1858_v12, %v1854_v29  ;;  %v4223_v33 = vpop.f32.mrb[4].mxu0 }
 0x16f   : > { %v4231_v55 = vpop.f32.mrb[5].mxu0 }
 0x170   : > { %2293 = vmatprep.mubr.bf16.mxu0 %v1862_v31  ;;  %v4236_v37 = vpop.f32.mrb[6].mxu0 }
 0x171   : > { %2294 = vmatmul.mubr.bf16.vlgmr.msra.gmra.mrb[8].mxu0 %v1861_v30  ;;  %v4238_v38 = vpop.f32.mrb[7].mxu0 }
 0x172   : > { %2305 = vmatpush1.bf16.msra.mxu0 %v3326_v32 }
 0x173   : > { %2306 = vmatprep.subr.bf16.mxu0 %v3331_v35  ;;  %v3386_v35 = vld [vmem:[%s4384_s5 + $0x70] sm:$0xff]  }
 0x176   : > { %2307 = vmatpush1.bf16.msra.mxu0 %v3329_v39 }
 0x177   : > { %2308 = vmatprep.subr.bf16.mxu0 %v3334_v41 }
 0x17a   : > { %2309 = vmatpush1.bf16.msra.mxu0 %v3332_v43 }
 0x17b   : > { %2310 = vmatprep.subr.bf16.mxu0 %v3337_v46 }
 0x17e   : > { %2311 = vmatpush1.bf16.msra.mxu0 %v3335_v48 }
 0x17f   : > { %2312 = vmatprep.subr.bf16.mxu0 %v3340_v49 }
 0x182   : > { %2313 = vmatpush1.bf16.msra.mxu0 %v3338_v50 }
 0x183   : > { %2314 = vmatprep.subr.bf16.mxu0 %v3343_v51 }
 0x186   : > { %2315 = vmatpush1.bf16.msra.mxu0 %v3341_v52 }
 0x187   : > { %2316 = vmatprep.subr.bf16.mxu0 %v3346_v53 }
 0x18a   : > { %2317 = vmatpush1.bf16.msra.mxu0 %v3344_v54 }
 0x18b   : > { %2318 = vmatprep.subr.bf16.mxu0 %v3349_v56 }
 0x18e   : > { %2319 = vmatpush1.bf16.msra.mxu0 %v3347_v57 }
 0x18f   : > { %2320 = vmatprep.subr.bf16.mxu0 %v3352_v58 }
 0x192   : > { %2321 = vmatpush1.bf16.msra.mxu0 %v3350_v59 }
 0x193   : > { %2322 = vmatprep.subr.bf16.mxu0 %v3355_v60 }
 0x196   : > { %2323 = vmatpush1.bf16.msra.mxu0 %v3353_v61 }
 0x197   : > { %2324 = vmatprep.subr.bf16.mxu0 %v3358_v62 }
 0x19a   : > { %2325 = vmatpush1.bf16.msra.mxu0 %v3356_v63 }
 0x19b   : > { %2326 = vmatprep.subr.bf16.mxu0 %v3361_v0 }
 0x19e   : > { %2327 = vmatpush1.bf16.msra.mxu0 %v3359_v1 }
 0x19f   : > { %2328 = vmatprep.subr.bf16.mxu0 %v3364_v2 }
 0x1a2   : > { %2329 = vmatpush1.bf16.msra.mxu0 %v3362_v3 }
 0x1a3   : > { %2330 = vmatprep.subr.bf16.mxu0 %v3367_v22 }
 0x1a6   : > { %2331 = vmatpush1.bf16.msra.mxu0 %v3365_v8 }
 0x1a7   : > { %2332 = vmatprep.subr.bf16.mxu0 %v3370_v9 }
 0x1aa   : > { %2333 = vmatpush1.bf16.msra.mxu0 %v3368_v10 }
 0x1ab   : > { %2334 = vmatprep.subr.bf16.mxu0 %v3373_v11 }
 0x1ae   : > { %2335 = vmatpush1.bf16.msra.mxu0 %v3371_v13 }
 0x1d9   : > { %v1801_v19 = vpop.f32.mrb[4].mxu1 }
 0x1da   : > { %v2942_v20 = vadd.f32 %v1801_v19, %v516_v17  ;;  %v1803_v21 = vpop.f32.mrb[5].mxu1 }
 0x1db   : > { %v2944_v23 = vadd.f32 %v1803_v21, %v520_v18  ;;  %v1805_v24 = vpop.f32.mrb[6].mxu1 }
 0x1dc   : > { %v2943_v25 = vadd.f32 %v2942_v20, %v4223_v33  ;;  %v2946_v26 = vadd.f32 %v1805_v24, %v516_v17  ;;  %v1807_v27 = vpop.f32.mrb[7].mxu1  ;;  %v3385_v33 = vld [vmem:[%s4384_s5 + $0x28] sm:$0xff]  }
 0x1dd   : > { %v2945_v28 = vadd.f32 %v2944_v23, %v4231_v55  ;;  %v2948_v15 = vadd.f32 %v1807_v27, %v520_v18  ;;  %2923 = vmatpush3.bf16.msra.mxu1 %v3385_v33  ;;  %v3387_v55 = vld [vmem:[%s4384_s5 + $0x30] sm:$0xff]  }
 0x1de   : > { %v2947_v44 = vadd.f32 %v2946_v26, %v4236_v37  ;;  %v1855_v12 = vmax.f32 %v2943_v25, 0.0  ;;  %2924 = vmatprep.subr.bf16.mxu1 %v3386_v35  ;;  %v3389_v37 = vld [vmem:[%s4384_s5 + $0x38] sm:$0xff]  }
 0x1df   : > { %v2949_v29 = vadd.f32 %v2948_v15, %v4238_v38  ;;  %v1856_v31 = vmax.f32 %v2945_v28, 0.0  ;;  %v1929_v38 = vld [vmem:[%s4383_s4] sm:$0x3] }
 0x1e0   : > { %v1859_v30 = vmax.f32 %v2947_v44, 0.0  ;;  %v1934_v39 = vrot.slane %v1929_v38, %v507_v5  ;;  %v1938_v40 = vrot.slane %v1929_v38, %v511_v7 }
 0x1e1   : > { %v1860_v6 = vmax.f32 %v2949_v29, 0.0  ;;  %2925 = vmatpush3.bf16.msra.mxu1 %v3387_v55 }
 0x1e2   : > { %v1863_v32 = vpack.c.bf16 %v1859_v30, %v1855_v12  ;;  %2926 = vmatprep.subr.bf16.mxu1 %v3388_v36 }
 0x1e3   : > { %v1864_v34 = vpack.c.bf16 %v1860_v6, %v1856_v31 }
 0x1e5   : > { %2336 = vmatprep.mubr.bf16.mxu0 %v1864_v34  ;;  %2927 = vmatpush3.bf16.msra.mxu1 %v3389_v37 }
 0x1e6   : > { %2337 = vmatmul.mubr.bf16.vlgmr.msra.gmra.mrb[8].mxu0 %v1863_v32 }
 0x2b9   : > { %v2338_v41 = vpop.f32.mrb[8].mxu0 }
 0x2ba   : > { %v2950_v42 = vadd.f32 %v2338_v41, %v1934_v39  ;;  %v2340_v43 = vpop.f32.mrb[9].mxu0 }
 0x2bb   : > { %v2951_v45 = vadd.f32 %v2340_v43, %v1938_v40  ;;  %v2342_v46 = vpop.f32.mrb[10].mxu0 }
 0x2bc   : > { %v2952_v47 = vadd.f32 %v2342_v46, %v1934_v39  ;;  %v2344_v48 = vpop.f32.mrb[11].mxu0  ;;  %v2347_v50 = vmax.f32 %v2950_v42, 0.0 }
 0x2bd   : > { %v2953_v49 = vadd.f32 %v2344_v48, %v1938_v40  ;;  %v2348_v52 = vmax.f32 %v2951_v45, 0.0 }
 0x2be   : > { %v2349_v51 = vmax.f32 %v2952_v47, 0.0 }
 0x2bf   : > { %v2350_v53 = vmax.f32 %v2953_v49, 0.0 }
 0x2c0   : > { %v2351_v54 = vpack.c.bf16 %v2349_v51, %v2347_v50 }
 0x2c1   : > { %v2352_v56 = vpack.c.bf16 %v2350_v53, %v2348_v52 }
 0x2c3   : > { %2520 = vmatprep.mubr.bf16.mxu1 %v2352_v56 }
 0x2c4   : > { %2521 = vmatmul.mubr.bf16.vlgmr.msra.gmra.mrb[8].mxu1 %v2351_v54 }
 0x397   : > { %v2928_v5 = vpop.f32.mrb[8].mxu1 }
 0x398   : > { %v2929_v57 = vpop.f32.mrb[9].mxu1 }
 0x399   : > { %v2930_v7 = vadd.f32 %v2929_v57, %v2928_v5  ;;  %v2931_v58 = vpop.f32.mrb[10].mxu1 }
 0x39a   : > { %v2932_v59 = vpop.f32.mrb[11].mxu1 }
 0x39b   : > { %v2933_v60 = vadd.f32 %v2932_v59, %v2931_v58  ;;  %v2523_v61 = vadd.f32 %v2930_v7, %v2884_v4 }
 0x39d   : > { %2529 = vmax.xlane.f32.xlu0 %v2523_v61  ;;  %v2526_v62 = vadd.f32 %v2933_v60, %v2884_v4 }
 0x3a1   : > { %2531 = vmax.xlane.f32.xlu0 %v2526_v62 }
 0x42a   : > { %v2530_v63 = vpop.xlane.xlu0 %2529 }
 0x42b   : > { %v2533_v0 = vsub.f32 %v2523_v61, %v2530_v63 }
 0x42d   : > { %v2535_v1 = vmul.f32 1.442695, %v2533_v0 }
 0x42e   : > { %v2532_v2 = vpop.xlane.xlu0 %2531 }
 0x42f   : > { %3390 = vpow2.f32 %v2535_v1  ;;  %v2534_v3 = vsub.f32 %v2526_v62, %v2532_v2 }
 0x431   : > { %v2537_v22 = vmul.f32 1.442695, %v2534_v3 }
 0x433   : > { %3392 = vpow2.f32 %v2537_v22 }
 0x439   : > { %v3391_v8 = vpop.eup %3390 }
 0x43a   : > { %2539 = vadd.xlane.f32.xlu1 %v3391_v8 }
 0x43d   : > { %v3393_v9 = vpop.eup %3392 }
 0x43e   : > { %2541 = vadd.xlane.f32.xlu1 %v3393_v9 }
 0x4c7   : > { %v2540_v10 = vpop.xlane.xlu1 %2539 }
 0x4c8   : > { %3394 = vrcp.f32 %v2540_v10 }
 0x4cb   : > { %v2542_v11 = vpop.xlane.xlu1 %2541 }
 0x4cc   : > { %3396 = vrcp.f32 %v2542_v11 }
 0x4d2   : > { %v3395_v13 = vpop.eup %3394 }
 0x4d3   : > { %v2544_v16 = vmul.f32 %v3395_v13, %v3391_v8 }
 0x4d6   : > { %v3397_v14 = vpop.eup %3396 }
 0x4d7   : > { %v2546_v17 = vmul.f32 %v3397_v14, %v3393_v9 }
 0x4d9   : > { %v2910_v18 = vpack.c.bf16 %v2546_v17, %v2544_v16 }
 0x4db   : > { %2911 = vst [vmem:[%s283_s9] sm:$0xff] %v2910_v18  }
 0x4dc PF: > { %s17_s24 = sadd.s32 1, %s3404_s24  }
 0x4dd   : > { %p14_p4 = scmp.ge.s32.totalorder %s17_s24, 4  }
 0x4df   :  { %16 = sbr.rel (!%p14_p4) target bundleno = 1 (0x1), region = 78 }

</bundles_post_ra>
